<compile_context>
chip_gen: v5e
topology: v5e:2x2
jax: 0.10.0
libtpu: 0.0.40
codegen_flags: <defaults>
</compile_context>

<pallas_src>
import jax
import jax.numpy as jnp
from jax.experimental import pallas as pl
from jax.experimental.pallas import tpu as pltpu

ALPHA = 0.85
BETA = 0.15
C1 = 0.01 ** 2
C2 = 0.03 ** 2


def custom_loss_kernel(pred_ref, tgt_ref, out_ref, acc_ref):
    i = pl.program_id(0)
    n_steps = pl.num_programs(0)
    Nt, H, W = pred_ref.shape

    @pl.when(i == 0)
    def _init():
        acc_ref[0] = jnp.float32(0.0)
        acc_ref[1] = jnp.float32(0.0)

    # DMA native dtype; do math in f32 (no-op cast for f32 inputs).
    p = pred_ref[...].astype(jnp.float32)
    t = tgt_ref[...].astype(jnp.float32)

    # Edge masks emulating the 1-pixel zero padding of the 3x3 pool.
    h_idx = jax.lax.broadcasted_iota(jnp.int32, (Nt, H, W), 1)
    w_idx = jax.lax.broadcasted_iota(jnp.int32, (Nt, H, W), 2)
    not_top = h_idx > 0
    not_bot = h_idx < (H - 1)
    not_left = w_idx > 0
    not_right = w_idx < (W - 1)
    zero = jnp.zeros((Nt, H, W), jnp.float32)

    def vsum3(x):  # x[h-1] + x[h] + x[h+1] with zero padding
        up = jnp.where(not_top, pltpu.roll(x, 1, axis=1), zero)
        dn = jnp.where(not_bot, pltpu.roll(x, H - 1, axis=1), zero)
        return up + x + dn

    def hsum3(x):  # x[w-1] + x[w] + x[w+1] with zero padding
        lf = jnp.where(not_left, pltpu.roll(x, 1, axis=2), zero)
        rt = jnp.where(not_right, pltpu.roll(x, W - 1, axis=2), zero)
        return lf + x + rt

    def pool3x3(x):  # separable 3x3 average, count_include_pad => divide by 9
        return hsum3(vsum3(x)) * (1.0 / 9.0)

    mu_x = pool3x3(p)
    mu_y = pool3x3(t)
    sigma_x = pool3x3(p * p) - mu_x * mu_x
    sigma_y = pool3x3(t * t) - mu_y * mu_y
    sigma_xy = pool3x3(p * t) - mu_x * mu_y

    ssim_n = (2.0 * mu_x * mu_y + C1) * (2.0 * sigma_xy + C2)
    ssim_d = (mu_x * mu_x + mu_y * mu_y + C1) * (sigma_x + sigma_y + C2)
    ssim_map = ssim_n * pl.reciprocal(ssim_d, approx=False)

    ssim_part = jnp.sum(jnp.clip((1.0 - ssim_map) * 0.5, 0.0, 1.0))
    l1_part = jnp.sum(jnp.abs(p - t))

    acc_ref[0] += ssim_part
    acc_ref[1] += l1_part

    @pl.when(i == n_steps - 1)
    def _finalize():
        out_ref[0] = acc_ref[0]
        out_ref[1] = acc_ref[1]


def custom_loss(pred, target, *, n_tile=None, block_bytes_budget=2 * 1024 * 1024):
    """pred, target: NCHW arrays. Returns scalar loss (float32)."""
    B, C, H, W = pred.shape
    N = B * C
    p = pred.reshape(N, H, W)
    t = target.reshape(N, H, W)

    if n_tile is None:
        plane_bytes = H * W * jnp.dtype(p.dtype).itemsize
        max_tile = max(1, int(block_bytes_budget // plane_bytes))
        n_tile = 1
        for d in range(min(N, max_tile), 0, -1):
            if N % d == 0:
                n_tile = d
                break
    if N % n_tile != 0:
        raise ValueError(f"n_tile={n_tile} must divide N={N}")

    grid = (N // n_tile,)

    sums = pl.pallas_call(
        custom_loss_kernel,
        out_shape=jax.ShapeDtypeStruct((2,), jnp.float32),
        grid_spec=pltpu.PrefetchScalarGridSpec(
            num_scalar_prefetch=0,
            grid=grid,
            in_specs=[
                pl.BlockSpec((n_tile, H, W), lambda i: (i, 0, 0)),
                pl.BlockSpec((n_tile, H, W), lambda i: (i, 0, 0)),
            ],
            out_specs=pl.BlockSpec(memory_space=pltpu.MemorySpace.SMEM),
            scratch_shapes=[pltpu.SMEM((2,), jnp.float32)],
        ),
        compiler_params=pltpu.CompilerParams(
            # Accumulation across the tiled N axis -> arbitrary.
            # TODO(synk): per-core partial sums + "parallel" for v7x megacore.
            dimension_semantics=("arbitrary",)),
    )(p, t)

    total = jnp.float32(N * H * W)
    ssim = sums[0] / total
    l1 = sums[1] / total
    return ALPHA * ssim + BETA * l1


def _ref_loss(pred, target, alpha=ALPHA, beta=BETA):
    """Pure-JAX reference mirroring the PyTorch module."""
    def pool(x):
        xp = jnp.pad(x, ((0, 0), (0, 0), (1, 1), (1, 1)))
        H, W = x.shape[2], x.shape[3]
        acc = jnp.zeros_like(x)
        for dh in range(3):
            for dw in range(3):
                acc = acc + xp[:, :, dh:dh + H, dw:dw + W]
        return acc / 9.0

    mu_x = pool(pred)
    mu_y = pool(target)
    sigma_x = pool(pred ** 2) - mu_x ** 2
    sigma_y = pool(target ** 2) - mu_y ** 2
    sigma_xy = pool(pred * target) - mu_x * mu_y
    ssim_n = (2 * mu_x * mu_y + C1) * (2 * sigma_xy + C2)
    ssim_d = (mu_x ** 2 + mu_y ** 2 + C1) * (sigma_x + sigma_y + C2)
    ssim_map = ssim_n / ssim_d
    ssim = jnp.mean(jnp.clip((1 - ssim_map) / 2, 0.0, 1.0))
    l1 = jnp.mean(jnp.abs(pred - target))
    return alpha * ssim + beta * l1


if __name__ == "__main__":
    key = jax.random.PRNGKey(0)
    k1, k2 = jax.random.split(key)
    B, C, H, W = 2, 4, 16, 16
    pred = jax.random.normal(k1, (B, C, H, W), dtype=jnp.float32)
    target = jax.random.normal(k2, (B, C, H, W), dtype=jnp.float32)

    ref = _ref_loss(pred, target)

    # Force a multi-step grid (N=8, tile=2 -> 4 steps) to exercise the
    # cross-step accumulation path.
    loss_tiled = jax.block_until_ready(custom_loss(pred, target, n_tile=2))
    assert jnp.allclose(loss_tiled, ref, atol=1e-5, rtol=1e-5), (loss_tiled, ref)

    # Auto tile-size path.
    loss_auto = jax.block_until_ready(custom_loss(pred, target))
    assert jnp.allclose(loss_auto, ref, atol=1e-5, rtol=1e-5), (loss_auto, ref)

    print("KERNEL_OK")
</pallas_src>

<mosaic_0001>
module attributes {stable_mosaic.version = 11 : i64} {
  func.func @custom_loss_kernel(%arg0: i32, %arg1: memref<2x16x16xf32, #tpu.memory_space<vmem>>, %arg2: memref<2x16x16xf32, #tpu.memory_space<vmem>>, %arg3: memref<2xf32, #tpu.memory_space<smem>>, %arg4: memref<2xf32, #tpu.memory_space<smem>>) attributes {dimension_semantics = [#tpu.dimension_semantics<arbitrary>], iteration_bounds = array<i64: 4>, scalar_prefetch = 0 : i64, scratch_operands = 1 : i64, tpu.core_type = #tpu.core_type<tc>, window_params = [{transform_indices = @transform_0, window_bounds = array<i64: 2, 16, 16>}, {transform_indices = @transform_1, window_bounds = array<i64: 2, 16, 16>}, {transform_indices = @transform_2, window_bounds = array<i64: 2>}]} {
    %c0_i32 = arith.constant 0 : i32
    %0 = arith.cmpi eq, %arg0, %c0_i32 : i32
    %1 = arith.extui %0 : i1 to i32
    %c0_i32_0 = arith.constant 0 : i32
    %2 = arith.cmpi ne, %1, %c0_i32_0 : i32
    scf.if %2 {
      %cst_49 = arith.constant 0.000000e+00 : f32
      %c0_50 = arith.constant 0 : index
      %143 = memref.load %arg4[%c0_50] : memref<2xf32, #tpu.memory_space<smem>>
      memref.store %cst_49, %arg4[%c0_50] : memref<2xf32, #tpu.memory_space<smem>>
      %cst_51 = arith.constant 0.000000e+00 : f32
      %c1_52 = arith.constant 1 : index
      %144 = memref.load %arg4[%c1_52] : memref<2xf32, #tpu.memory_space<smem>>
      memref.store %cst_51, %arg4[%c1_52] : memref<2xf32, #tpu.memory_space<smem>>
    } else {
    }
    %c0 = arith.constant 0 : index
    %c0_1 = arith.constant 0 : index
    %c0_2 = arith.constant 0 : index
    %3 = vector.load %arg1[%c0, %c0_1, %c0_2] : memref<2x16x16xf32, #tpu.memory_space<vmem>>, vector<2x16x16xf32>
    %c0_3 = arith.constant 0 : index
    %c0_4 = arith.constant 0 : index
    %c0_5 = arith.constant 0 : index
    %4 = vector.load %arg2[%c0_3, %c0_4, %c0_5] : memref<2x16x16xf32, #tpu.memory_space<vmem>>, vector<2x16x16xf32>
    %5 = tpu.iota {dimensions = array<i32: 1>} : vector<2x16x16xi32>
    %6 = tpu.iota {dimensions = array<i32: 2>} : vector<2x16x16xi32>
    %c0_i32_6 = arith.constant 0 : i32
    %7 = vector.broadcast %c0_i32_6 : i32 to vector<2x16x16xi32>
    %8 = arith.cmpi sgt, %5, %7 : vector<2x16x16xi32>
    %c15_i32 = arith.constant 15 : i32
    %9 = vector.broadcast %c15_i32 : i32 to vector<2x16x16xi32>
    %10 = arith.cmpi slt, %5, %9 : vector<2x16x16xi32>
    %c0_i32_7 = arith.constant 0 : i32
    %11 = vector.broadcast %c0_i32_7 : i32 to vector<2x16x16xi32>
    %12 = arith.cmpi sgt, %6, %11 : vector<2x16x16xi32>
    %c15_i32_8 = arith.constant 15 : i32
    %13 = vector.broadcast %c15_i32_8 : i32 to vector<2x16x16xi32>
    %14 = arith.cmpi slt, %6, %13 : vector<2x16x16xi32>
    %cst = arith.constant 0.000000e+00 : f32
    %15 = vector.broadcast %cst : f32 to vector<2x16x16xf32>
    %c1_i32 = arith.constant 1 : i32
    %16 = tpu.dynamic_rotate %3 by %c1_i32 dim 1 : vector<2x16x16xf32>, i32 -> vector<2x16x16xf32>
    %17 = arith.select %8, %16, %15 : vector<2x16x16xi1>, vector<2x16x16xf32>
    %c15_i32_9 = arith.constant 15 : i32
    %18 = tpu.dynamic_rotate %3 by %c15_i32_9 dim 1 : vector<2x16x16xf32>, i32 -> vector<2x16x16xf32>
    %19 = arith.select %10, %18, %15 : vector<2x16x16xi1>, vector<2x16x16xf32>
    %20 = arith.addf %17, %3 : vector<2x16x16xf32>
    %21 = arith.addf %20, %19 : vector<2x16x16xf32>
    %c1_i32_10 = arith.constant 1 : i32
    %22 = tpu.dynamic_rotate %21 by %c1_i32_10 dim 2 : vector<2x16x16xf32>, i32 -> vector<2x16x16xf32>
    %23 = arith.select %12, %22, %15 : vector<2x16x16xi1>, vector<2x16x16xf32>
    %c15_i32_11 = arith.constant 15 : i32
    %24 = tpu.dynamic_rotate %21 by %c15_i32_11 dim 2 : vector<2x16x16xf32>, i32 -> vector<2x16x16xf32>
    %25 = arith.select %14, %24, %15 : vector<2x16x16xi1>, vector<2x16x16xf32>
    %26 = arith.addf %23, %21 : vector<2x16x16xf32>
    %27 = arith.addf %26, %25 : vector<2x16x16xf32>
    %cst_12 = arith.constant 0.111111112 : f32
    %28 = vector.broadcast %cst_12 : f32 to vector<2x16x16xf32>
    %29 = arith.mulf %27, %28 : vector<2x16x16xf32>
    %c1_i32_13 = arith.constant 1 : i32
    %30 = tpu.dynamic_rotate %4 by %c1_i32_13 dim 1 : vector<2x16x16xf32>, i32 -> vector<2x16x16xf32>
    %31 = arith.select %8, %30, %15 : vector<2x16x16xi1>, vector<2x16x16xf32>
    %c15_i32_14 = arith.constant 15 : i32
    %32 = tpu.dynamic_rotate %4 by %c15_i32_14 dim 1 : vector<2x16x16xf32>, i32 -> vector<2x16x16xf32>
    %33 = arith.select %10, %32, %15 : vector<2x16x16xi1>, vector<2x16x16xf32>
    %34 = arith.addf %31, %4 : vector<2x16x16xf32>
    %35 = arith.addf %34, %33 : vector<2x16x16xf32>
    %c1_i32_15 = arith.constant 1 : i32
    %36 = tpu.dynamic_rotate %35 by %c1_i32_15 dim 2 : vector<2x16x16xf32>, i32 -> vector<2x16x16xf32>
    %37 = arith.select %12, %36, %15 : vector<2x16x16xi1>, vector<2x16x16xf32>
    %c15_i32_16 = arith.constant 15 : i32
    %38 = tpu.dynamic_rotate %35 by %c15_i32_16 dim 2 : vector<2x16x16xf32>, i32 -> vector<2x16x16xf32>
    %39 = arith.select %14, %38, %15 : vector<2x16x16xi1>, vector<2x16x16xf32>
    %40 = arith.addf %37, %35 : vector<2x16x16xf32>
    %41 = arith.addf %40, %39 : vector<2x16x16xf32>
    %cst_17 = arith.constant 0.111111112 : f32
    %42 = vector.broadcast %cst_17 : f32 to vector<2x16x16xf32>
    %43 = arith.mulf %41, %42 : vector<2x16x16xf32>
    %44 = arith.mulf %3, %3 : vector<2x16x16xf32>
    %c1_i32_18 = arith.constant 1 : i32
    %45 = tpu.dynamic_rotate %44 by %c1_i32_18 dim 1 : vector<2x16x16xf32>, i32 -> vector<2x16x16xf32>
    %46 = arith.select %8, %45, %15 : vector<2x16x16xi1>, vector<2x16x16xf32>
    %c15_i32_19 = arith.constant 15 : i32
    %47 = tpu.dynamic_rotate %44 by %c15_i32_19 dim 1 : vector<2x16x16xf32>, i32 -> vector<2x16x16xf32>
    %48 = arith.select %10, %47, %15 : vector<2x16x16xi1>, vector<2x16x16xf32>
    %49 = arith.addf %46, %44 : vector<2x16x16xf32>
    %50 = arith.addf %49, %48 : vector<2x16x16xf32>
    %c1_i32_20 = arith.constant 1 : i32
    %51 = tpu.dynamic_rotate %50 by %c1_i32_20 dim 2 : vector<2x16x16xf32>, i32 -> vector<2x16x16xf32>
    %52 = arith.select %12, %51, %15 : vector<2x16x16xi1>, vector<2x16x16xf32>
    %c15_i32_21 = arith.constant 15 : i32
    %53 = tpu.dynamic_rotate %50 by %c15_i32_21 dim 2 : vector<2x16x16xf32>, i32 -> vector<2x16x16xf32>
    %54 = arith.select %14, %53, %15 : vector<2x16x16xi1>, vector<2x16x16xf32>
    %55 = arith.addf %52, %50 : vector<2x16x16xf32>
    %56 = arith.addf %55, %54 : vector<2x16x16xf32>
    %cst_22 = arith.constant 0.111111112 : f32
    %57 = vector.broadcast %cst_22 : f32 to vector<2x16x16xf32>
    %58 = arith.mulf %56, %57 : vector<2x16x16xf32>
    %59 = arith.mulf %29, %29 : vector<2x16x16xf32>
    %60 = arith.subf %58, %59 : vector<2x16x16xf32>
    %61 = arith.mulf %4, %4 : vector<2x16x16xf32>
    %c1_i32_23 = arith.constant 1 : i32
    %62 = tpu.dynamic_rotate %61 by %c1_i32_23 dim 1 : vector<2x16x16xf32>, i32 -> vector<2x16x16xf32>
    %63 = arith.select %8, %62, %15 : vector<2x16x16xi1>, vector<2x16x16xf32>
    %c15_i32_24 = arith.constant 15 : i32
    %64 = tpu.dynamic_rotate %61 by %c15_i32_24 dim 1 : vector<2x16x16xf32>, i32 -> vector<2x16x16xf32>
    %65 = arith.select %10, %64, %15 : vector<2x16x16xi1>, vector<2x16x16xf32>
    %66 = arith.addf %63, %61 : vector<2x16x16xf32>
    %67 = arith.addf %66, %65 : vector<2x16x16xf32>
    %c1_i32_25 = arith.constant 1 : i32
    %68 = tpu.dynamic_rotate %67 by %c1_i32_25 dim 2 : vector<2x16x16xf32>, i32 -> vector<2x16x16xf32>
    %69 = arith.select %12, %68, %15 : vector<2x16x16xi1>, vector<2x16x16xf32>
    %c15_i32_26 = arith.constant 15 : i32
    %70 = tpu.dynamic_rotate %67 by %c15_i32_26 dim 2 : vector<2x16x16xf32>, i32 -> vector<2x16x16xf32>
    %71 = arith.select %14, %70, %15 : vector<2x16x16xi1>, vector<2x16x16xf32>
    %72 = arith.addf %69, %67 : vector<2x16x16xf32>
    %73 = arith.addf %72, %71 : vector<2x16x16xf32>
    %cst_27 = arith.constant 0.111111112 : f32
    %74 = vector.broadcast %cst_27 : f32 to vector<2x16x16xf32>
    %75 = arith.mulf %73, %74 : vector<2x16x16xf32>
    %76 = arith.mulf %43, %43 : vector<2x16x16xf32>
    %77 = arith.subf %75, %76 : vector<2x16x16xf32>
    %78 = arith.mulf %3, %4 : vector<2x16x16xf32>
    %c1_i32_28 = arith.constant 1 : i32
    %79 = tpu.dynamic_rotate %78 by %c1_i32_28 dim 1 : vector<2x16x16xf32>, i32 -> vector<2x16x16xf32>
    %80 = arith.select %8, %79, %15 : vector<2x16x16xi1>, vector<2x16x16xf32>
    %c15_i32_29 = arith.constant 15 : i32
    %81 = tpu.dynamic_rotate %78 by %c15_i32_29 dim 1 : vector<2x16x16xf32>, i32 -> vector<2x16x16xf32>
    %82 = arith.select %10, %81, %15 : vector<2x16x16xi1>, vector<2x16x16xf32>
    %83 = arith.addf %80, %78 : vector<2x16x16xf32>
    %84 = arith.addf %83, %82 : vector<2x16x16xf32>
    %c1_i32_30 = arith.constant 1 : i32
    %85 = tpu.dynamic_rotate %84 by %c1_i32_30 dim 2 : vector<2x16x16xf32>, i32 -> vector<2x16x16xf32>
    %86 = arith.select %12, %85, %15 : vector<2x16x16xi1>, vector<2x16x16xf32>
    %c15_i32_31 = arith.constant 15 : i32
    %87 = tpu.dynamic_rotate %84 by %c15_i32_31 dim 2 : vector<2x16x16xf32>, i32 -> vector<2x16x16xf32>
    %88 = arith.select %14, %87, %15 : vector<2x16x16xi1>, vector<2x16x16xf32>
    %89 = arith.addf %86, %84 : vector<2x16x16xf32>
    %90 = arith.addf %89, %88 : vector<2x16x16xf32>
    %cst_32 = arith.constant 0.111111112 : f32
    %91 = vector.broadcast %cst_32 : f32 to vector<2x16x16xf32>
    %92 = arith.mulf %90, %91 : vector<2x16x16xf32>
    %93 = arith.mulf %29, %43 : vector<2x16x16xf32>
    %94 = arith.subf %92, %93 : vector<2x16x16xf32>
    %cst_33 = arith.constant 2.000000e+00 : f32
    %95 = vector.broadcast %cst_33 : f32 to vector<2x16x16xf32>
    %96 = arith.mulf %95, %29 : vector<2x16x16xf32>
    %97 = arith.mulf %96, %43 : vector<2x16x16xf32>
    %cst_34 = arith.constant 9.99999974E-5 : f32
    %98 = vector.broadcast %cst_34 : f32 to vector<2x16x16xf32>
    %99 = arith.addf %97, %98 : vector<2x16x16xf32>
    %cst_35 = arith.constant 2.000000e+00 : f32
    %100 = vector.broadcast %cst_35 : f32 to vector<2x16x16xf32>
    %101 = arith.mulf %100, %94 : vector<2x16x16xf32>
    %cst_36 = arith.constant 8.99999984E-4 : f32
    %102 = vector.broadcast %cst_36 : f32 to vector<2x16x16xf32>
    %103 = arith.addf %101, %102 : vector<2x16x16xf32>
    %104 = arith.mulf %99, %103 : vector<2x16x16xf32>
    %105 = arith.mulf %29, %29 : vector<2x16x16xf32>
    %106 = arith.mulf %43, %43 : vector<2x16x16xf32>
    %107 = arith.addf %105, %106 : vector<2x16x16xf32>
    %cst_37 = arith.constant 9.99999974E-5 : f32
    %108 = vector.broadcast %cst_37 : f32 to vector<2x16x16xf32>
    %109 = arith.addf %107, %108 : vector<2x16x16xf32>
    %110 = arith.addf %60, %77 : vector<2x16x16xf32>
    %cst_38 = arith.constant 8.99999984E-4 : f32
    %111 = vector.broadcast %cst_38 : f32 to vector<2x16x16xf32>
    %112 = arith.addf %110, %111 : vector<2x16x16xf32>
    %113 = arith.mulf %109, %112 : vector<2x16x16xf32>
    %114 = tpu.reciprocal %113 : vector<2x16x16xf32> -> vector<2x16x16xf32>
    %115 = arith.mulf %104, %114 : vector<2x16x16xf32>
    %cst_39 = arith.constant 1.000000e+00 : f32
    %116 = vector.broadcast %cst_39 : f32 to vector<2x16x16xf32>
    %117 = arith.subf %116, %115 : vector<2x16x16xf32>
    %cst_40 = arith.constant 5.000000e-01 : f32
    %118 = vector.broadcast %cst_40 : f32 to vector<2x16x16xf32>
    %119 = arith.mulf %117, %118 : vector<2x16x16xf32>
    %cst_41 = arith.constant 0.000000e+00 : f32
    %cst_42 = arith.constant 1.000000e+00 : f32
    %120 = vector.broadcast %cst_41 : f32 to vector<2x16x16xf32>
    %121 = arith.maximumf %120, %119 : vector<2x16x16xf32>
    %122 = vector.broadcast %cst_42 : f32 to vector<2x16x16xf32>
    %123 = arith.minimumf %122, %121 : vector<2x16x16xf32>
    %124 = vector.shape_cast %123 : vector<2x16x16xf32> to vector<1x2x16x16xf32>
    %cst_43 = arith.constant dense<0.000000e+00> : vector<1xf32>
    %125 = vector.multi_reduction <add>, %124, %cst_43 [1, 2, 3] : vector<1x2x16x16xf32> to vector<1xf32>
    %126 = vector.shape_cast %125 : vector<1xf32> to vector<1x1x1x1xf32>
    %127 = vector.extract %126[0, 0, 0, 0] : f32 from vector<1x1x1x1xf32>
    %128 = arith.subf %3, %4 : vector<2x16x16xf32>
    %129 = math.absf %128 : vector<2x16x16xf32>
    %130 = vector.shape_cast %129 : vector<2x16x16xf32> to vector<1x2x16x16xf32>
    %cst_44 = arith.constant dense<0.000000e+00> : vector<1xf32>
    %131 = vector.multi_reduction <add>, %130, %cst_44 [1, 2, 3] : vector<1x2x16x16xf32> to vector<1xf32>
    %132 = vector.shape_cast %131 : vector<1xf32> to vector<1x1x1x1xf32>
    %133 = vector.extract %132[0, 0, 0, 0] : f32 from vector<1x1x1x1xf32>
    %c0_45 = arith.constant 0 : index
    %134 = memref.load %arg4[%c0_45] : memref<2xf32, #tpu.memory_space<smem>>
    %135 = arith.addf %134, %127 : f32
    %c0_46 = arith.constant 0 : index
    %136 = memref.load %arg4[%c0_46] : memref<2xf32, #tpu.memory_space<smem>>
    memref.store %135, %arg4[%c0_46] : memref<2xf32, #tpu.memory_space<smem>>
    %c1 = arith.constant 1 : index
    %137 = memref.load %arg4[%c1] : memref<2xf32, #tpu.memory_space<smem>>
    %138 = arith.addf %137, %133 : f32
    %c1_47 = arith.constant 1 : index
    %139 = memref.load %arg4[%c1_47] : memref<2xf32, #tpu.memory_space<smem>>
    memref.store %138, %arg4[%c1_47] : memref<2xf32, #tpu.memory_space<smem>>
    %c3_i32 = arith.constant 3 : i32
    %140 = arith.cmpi eq, %arg0, %c3_i32 : i32
    %141 = arith.extui %140 : i1 to i32
    %c0_i32_48 = arith.constant 0 : i32
    %142 = arith.cmpi ne, %141, %c0_i32_48 : i32
    scf.if %142 {
      %c0_49 = arith.constant 0 : index
      %143 = memref.load %arg4[%c0_49] : memref<2xf32, #tpu.memory_space<smem>>
      %c0_50 = arith.constant 0 : index
      %144 = memref.load %arg3[%c0_50] : memref<2xf32, #tpu.memory_space<smem>>
      memref.store %143, %arg3[%c0_50] : memref<2xf32, #tpu.memory_space<smem>>
      %c1_51 = arith.constant 1 : index
      %145 = memref.load %arg4[%c1_51] : memref<2xf32, #tpu.memory_space<smem>>
      %c1_52 = arith.constant 1 : index
      %146 = memref.load %arg3[%c1_52] : memref<2xf32, #tpu.memory_space<smem>>
      memref.store %145, %arg3[%c1_52] : memref<2xf32, #tpu.memory_space<smem>>
    } else {
    }
    return
  }
  func.func @transform_0(%arg0: i32) -> (i32, i32, i32) {
    %c0_i32 = arith.constant 0 : i32
    %c0_i32_0 = arith.constant 0 : i32
    %c0_i32_1 = arith.constant 0 : i32
    return %arg0, %c0_i32, %c0_i32_0 : i32, i32, i32
  }
  func.func @transform_1(%arg0: i32) -> (i32, i32, i32) {
    %c0_i32 = arith.constant 0 : i32
    %c0_i32_0 = arith.constant 0 : i32
    %c0_i32_1 = arith.constant 0 : i32
    return %arg0, %c0_i32, %c0_i32_0 : i32, i32, i32
  }
  func.func @transform_2(%arg0: i32) -> i32 {
    %c0_i32 = arith.constant 0 : i32
    %c0_i32_0 = arith.constant 0 : i32
    return %c0_i32 : i32
  }
}

</mosaic_0001>

<bundles_post_ra>
// kernel: tpu_custom_call.1
= control target key start
LH: loop header
LB: loop body
LE: loop exit
PB: predicated region body
PF: predicated region fallthrough
CT: control target
= control target key end

     0   :  { %7 = vsyncpa [#allocation4], 0  ;;  %s2143_s0 = inlined_call_operand.hbm [shape: f32[8,16,16], index: 0, kind: input, shape index: {}]   ;;  %s2144_s1 = inlined_call_operand.hbm [shape: f32[8,16,16], index: 1, kind: input, shape index: {}]   ;;  %s2145_s2 = inlined_call_operand.hbm [shape: f32[2], index: 2, kind: output, shape index: {}]  }
   0x1   :  { %9 = vsyncpa [#allocation4 + $0x1], 0 }
   0x2   :  { %10 = vsyncpa [#allocation7], 0 }
   0x3   :  { %12 = vsyncpa [#allocation7 + $0x1], 0 }
   0x4   :  { %13 = vsyncpa [#allocation5], 0  ;;  %s1287_s9 = smov 0   ;;  %s1289_s10 = smov 0  }
   0x5   :  { %s1291_s11 = smov 0   ;;  %s1293_s12 = smov 0  }
   0x6 LB: > { %s1044_s13 = sadd.s32 4294967295, %s1263_s12   ;;  %s1307_s14 = sadd.s32 1, %s1263_s12   ;;  %s1263_s12 = sphi %s1293_s12, %s2157_s12   ;;  %s1259_s11 = sphi %s1291_s11, %s2156_s11   ;;  %s1255_s10 = sphi %s1289_s10, %s2155_s10   ;;  %s1251_s9 = sphi %s1287_s9, %s2154_s9  }
   0x7   : > { %s23_s15 = ssub.s32 %s1263_s12, %s1307_s14  ;;  %s26_s16 = sadd.s32 1, %s1259_s11 }
   0x8   : > { %p24_p0 = scmp.eq.s32.totalorder %s23_s15, 0  ;;  %p33_p1 = scmp.ne.s32.totalorder %s1259_s11, %s1255_s10 }
   0x9   : > { %p34_p2 = scmp.eq.s32.totalorder %s1263_s12, 0  ;;  %p39_p3 = scmp.ne.s32.totalorder %s1255_s10, %s1251_s9 }
   0xa   : > { %s1317_s17 = scalar_select %p24_p0, %s1259_s11, %s26_s16  }
   0xb   : > { %p1319_p4 = por %p34_p2, %p33_p1  ;;  %p1325_p5 = scmp.eq.s32.totalorder %s1044_s13, 0 }
   0xc   : > { %p1095_p6 = scmp.lt.s32.totalorder %s1263_s12, 4  ;;  %s1337_s21 = sand.u32 1, %s1259_s11  }
   0xd   : > { %p1332_p7 = por %p1325_p5, %p39_p3  ;;  %s1047_s22 = sshll.u32 %s1337_s21, 5 }
   0xe   : > { %s1067_s23 = sshll.u32 %s1263_s12, 5  ;;  %s114_s27 = scalar_lea.vmem [#allocation3], %s1047_s22 }
   0xf   : > { %s120_s26 = scalar_lea.hbm %s2143_s0, %s1067_s23  ;;  %s123_s28 = sshll.u32 %s114_s27, 4  ;;  %s124_s28 = int_to_ptr.vmem [resolvable:$true] %s123_s28 }
  0x10   : > { %s121_s29 = sshll.u32 %s120_s26, 4  ;;  %p1350_p8 = pnand %p1095_p6, %p1319_p4  ;;  %s122_s29 = int_to_ptr.hbm [resolvable:$true] %s121_s29 }
  0x11   : > { %p1055_p9 = scmp.ge.s32.totalorder %s1263_s12, 1  ;;  %s111_s3 = scalar_lea.sflag [#allocation4], %s1337_s21 }
  0x12   : > { %s1147_s4 = sshra.s32 %s122_s29, 4  ;;  %p1151_p11 = pneg %p1350_p8  ;;  %s1148_s4 = int_to_ptr.hbm [resolvable:$true] %s1147_s4 }
  0x13   : > { %s1149_s5 = scalar_lea.hbm %s1148_s4, 32  ;;  %s1154_s8 = scalar_lea.hbm %s2143_s0, 128 }
  0x14   : > { %p1150_p10 = scmp.ne.s32.totalorder %s1148_s4, %s1149_s5  ;;  %p1155_p0 = scmp.lt.s32.totalorder %s1148_s4, %s2143_s0 }
  0x15   : > { %p1156_p1 = scmp.lt.s32.totalorder %s1154_s8, %s1149_s5 }
  0x16   : > { %p1152_p12 = pnand %p1151_p11, %p1150_p10 }
  0x17   : > { %p1157_p2 = por %p1156_p1, %p1155_p0 }
  0x18   : > { %p1153_p13 = pneg %p1152_p12 }
  0x1a   : > { %p1158_p3 = pnand %p1157_p2, %p1153_p13 }
  0x1c   : > { %1161 = shalt.err (!%p1158_p3)
}
  0x1d   : > { %s1265_s16 = smov 128   ;;  %s1266_s18 = smov 8  }
  0x1e   : > { %1091 = dma.hbm_to_vmem [thread:$0]  (!%p1350_p8), %s122_s29, 512, %s124_s28, %s111_s3, %s1265_s16, %s1265_s16, %s1266_s18  }
  0x1f   : > { %p154_p4 = scmp.lt.s32.totalorder %s1263_s12, 5  ;;  %s143_s26 = scalar_lea.hbm %s2144_s1, %s1067_s23 }
  0x20   : > { %s144_s4 = sshll.u32 %s143_s26, 4  ;;  %s137_s5 = scalar_lea.vmem [#allocation6], %s1047_s22  ;;  %s145_s4 = int_to_ptr.hbm [resolvable:$true] %s144_s4 }
  0x21   : > { %p1377_p6 = pnand %p1055_p9, %p154_p4  ;;  %s146_s6 = sshll.u32 %s137_s5, 4  ;;  %s147_s6 = int_to_ptr.vmem [resolvable:$true] %s146_s6 }
  0x22   : > { %s134_s7 = scalar_lea.sflag [#allocation7], %s1337_s21  ;;  %s1177_s8 = sshra.s32 %s145_s4, 4  ;;  %s1178_s8 = int_to_ptr.hbm [resolvable:$true] %s1177_s8 }
  0x23   : > { %s1179_s28 = scalar_lea.hbm %s1178_s8, 32  ;;  %s1184_s3 = scalar_lea.hbm %s2144_s1, 128 }
  0x24   : > { %p1180_p10 = scmp.ne.s32.totalorder %s1178_s8, %s1179_s28  ;;  %p1185_p9 = scmp.lt.s32.totalorder %s1178_s8, %s2144_s1 }
  0x25   : > { %p1186_p0 = scmp.lt.s32.totalorder %s1184_s3, %s1179_s28 }
  0x26   : > { %p1182_p12 = pnand %p1180_p10, %p1151_p11 }
  0x27   : > { %p1187_p1 = por %p1186_p0, %p1185_p9 }
  0x28   : > { %p1183_p13 = pneg %p1182_p12 }
  0x2a   : > { %p1188_p2 = pnand %p1187_p1, %p1183_p13 }
  0x2c   : > { %1191 = shalt.err (!%p1188_p2)
}
  0x2d   : > { %1094 = dma.hbm_to_vmem [thread:$0]  (!%p1350_p8), %s145_s4, 512, %s147_s6, %s134_s7, %s1265_s16, %s1265_s16, %s1266_s18  }
  0x2e   : > { %158 = sbr.rel (%p1377_p6) target bundleno = 747 (0x2eb), region = 28  ;;  %s160_s21 = sand.u32 (!%p1377_p6), 1, %s1255_s10  }
  0x2f   : > { %s1056_s22 = sshll.u32 (!%p1377_p6), %s160_s21, 5  ;;  %s161_s24 = scalar_lea.sflag (!%p1377_p6), [#allocation4], %s160_s21 }
  0x30   : > { %s164_s25 = scalar_lea.vmem (!%p1377_p6), [#allocation3], %s1056_s22 }
  0x33   : > { %1238 = dma.done.wait (%p1332_p7), %s161_s24, 512  }
  0x34   : > { %1240 = vsyncadd (%p1332_p7), %s161_s24, 4294966784  ;;  %s171_s26 = scalar_lea.sflag [#allocation7], %s160_s21  ;;  %s1402_s5 = scalar_lea.vmem [#allocation6], %s1056_s22 }
  0x35   : > { %1242 = dma.done.wait (%p1332_p7), %s171_s26, 512  }
  0x36   : > { %1244 = vsyncadd (%p1332_p7), %s171_s26, 4294966784  ;;  %v214_v0 = vlaneseq  ;;  %v1416_v3 = vld [vmem:[%s1402_s5] sm:$0xff]  ;;  %v1419_v4 = vld [vmem:[%s1402_s5 + $0x8] sm:$0xff]  ;;  %s1267_s20 = smov 16   ;;  %vm259_vm4 = vcmask 1047680   ;;  %s1268_s30 = smov 113  }
  0x37   : > { %v1423_v5 = vld [vmem:[%s164_s25] sm:$0xff]  ;;  %v332_v6 = vrot.slane %v1416_v3, 7  ;;  %v334_v7 = vrot.slane %v1419_v4, 7  ;;  %v344_v8 = vrot.slane %v1416_v3, 1  ;;  %v346_v9 = vrot.slane %v1419_v4, 1  ;;  %v1430_v10 = vld [vmem:[%s164_s25 + $0x8] sm:$0xff] }
  0x38   : > { %v1409_v1 = vshrl.u32 %v214_v0, 7  ;;  %v1432_v11 = vld [vmem:[%s164_s25 + $0x10] sm:$0xff]  ;;  %v225_v12 = vrot.slane %v1423_v5, 7  ;;  %v227_v13 = vrot.slane %v1430_v10, 7  ;;  %v238_v14 = vrot.slane %v1423_v5, 1  ;;  %v1438_v16 = vld [vmem:[%s164_s25 + $0x18] sm:$0xff] }
  0x39   : > { %v240_v15 = vrot.slane %v1430_v10, 1  ;;  %v226_v19 = vrot.slane %v1432_v11, 7  ;;  %v228_v20 = vrot.slane %v1438_v16, 7  ;;  %v239_v28 = vrot.slane %v1432_v11, 1  ;;  %v1468_v29 = vld [vmem:[%s1402_s5 + $0x10] sm:$0xff]  ;;  %v1471_v30 = vld [vmem:[%s1402_s5 + $0x18] sm:$0xff] }
  0x3a   : > { %v1412_v2 = vadd.s32 8, %v1409_v1  ;;  %vm229_vm0 = vcmp.lt.s32.totalorder %v1409_v1, 1  ;;  %vm242_vm2 = vcmp.lt.s32.totalorder %v1409_v1, 7  ;;  %vm219_vm3 = vcmp.gt.s32.totalorder %v1409_v1, 0  ;;  %s1269_s16 = smov 127   ;;  %s1270_s18 = smov 0.0  }
  0x3b   : > { %v336_v17 = vsel %vm229_vm0, %v332_v6, %v334_v7  ;;  %v350_v18 = vsel %vm242_vm2, %v346_v9, %v344_v8  ;;  %v230_v23 = vsel %vm229_vm0, %v225_v12, %v227_v13  ;;  %v245_v24 = vsel %vm242_vm2, %v240_v15, %v238_v14  ;;  %1079 = sst [smem:[#allocation2]] (%p1325_p5), %s1270_s18  ;;  %s969_s28 = sshll.u32 %s2145_s2, 4  ;;  %s970_s28 = int_to_ptr.hbm [resolvable:$true] %s969_s28 }
  0x3c   : > { %vm222_vm1 = vcmp.lt.s32.totalorder %v1412_v2, 15  ;;  %v357_v22 = vadd.f32 %v336_v17, %v1419_v4  ;;  %v252_v26 = vadd.f32 %v230_v23, %v1430_v10  ;;  %v233_v27 = vsel %vm229_vm0, %v228_v20, %v226_v19  ;;  %1080 = sst [smem:[#allocation2 + $0x1]] (%p1325_p5), %s1270_s18  ;;  %p2113_p5 = scmp.eq.s32.totalorder %s1044_s13, 3 }
  0x3d   : > { %v353_v21 = vsel %vm222_vm1, %v350_v18, 0.0  ;;  %v248_v25 = vsel %vm222_vm1, %v245_v24, 0.0  ;;  %v236_v32 = vsel %vm219_vm3, %v233_v27, 0.0  ;;  %v241_v33 = vrot.slane %v1438_v16, 1  ;;  %s945_s27 = sld [smem:[#allocation2]]  ;;  %s1271_s12 = smov [#allocation8]  }
  0x3e   : > { %v1473_v31 = vadd.f32 %v357_v22, %v353_v21  ;;  %v338_v34 = vsel %vm229_vm0, %v334_v7, %v332_v6  ;;  %v1480_v35 = vadd.f32 %v252_v26, %v248_v25  ;;  %v253_v36 = vadd.f32 %v236_v32, %v1432_v11  ;;  %s1059_s19 = sld [smem:[#allocation2 + $0x1]] }
  0x3f   : > { %v340_v37 = vsel %vm219_vm3, %v338_v34, 0.0  ;;  %v348_v38 = vsel %vm242_vm2, %v344_v8, %v346_v9  ;;  %v244_v39 = vsel %vm242_vm2, %v239_v28, %v241_v33  ;;  %v333_v41 = vrot.slane %v1468_v29, 7 }
  0x40   : > { %367 = vrot.lane.b32.xlu1 %v1473_v31, %s1267_s20  ;;  %v356_v40 = vadd.f32 %v340_v37, %v1416_v3  ;;  %v335_v42 = vrot.slane %v1471_v30, 7  ;;  %263 = vrot.lane.b32.xlu0 %v1480_v35, %s1267_s20  ;;  %v1496_v43 = vadd.f32 %v253_v36, %v244_v39  ;;  %v345_v44 = vrot.slane %v1468_v29, 1 }
  0x41   : > { %v347_v45 = vrot.slane %v1471_v30, 1  ;;  %v436_v46 = vmul.f32 %v1423_v5, %v1423_v5  ;;  %v437_v49 = vmul.f32 %v1430_v10, %v1430_v10  ;;  %v552_v50 = vmul.f32 %v1416_v3, %v1416_v3 }
  0x42   : > { %v1502_v47 = vadd.f32 %v356_v40, %v348_v38  ;;  %v339_v48 = vsel %vm229_vm0, %v335_v42, %v333_v41  ;;  %266 = vrot.lane.b32.xlu2 %v1496_v43, %s1267_s20  ;;  %v553_v58 = vmul.f32 %v1419_v4, %v1419_v4  ;;  %v231_v21 = vsel %vm229_vm0, %v226_v19, %v228_v20 }
  0x43   : > { %v342_v51 = vsel %vm219_vm3, %v339_v48, 0.0  ;;  %v349_v52 = vsel %vm242_vm2, %v345_v44, %v347_v45  ;;  %v440_v53 = vrot.slane %v436_v46, 7  ;;  %v452_v54 = vrot.slane %v436_v46, 1 }
  0x44   : > { %v358_v55 = vadd.f32 %v342_v51, %v1468_v29  ;;  %v442_v56 = vrot.slane %v437_v49, 7  ;;  %v454_v57 = vrot.slane %v437_v49, 1  ;;  %v556_v59 = vrot.slane %v552_v50, 7 }
  0x45   : > { %v558_v62 = vrot.slane %v553_v58, 7  ;;  %v568_v8 = vrot.slane %v552_v50, 1  ;;  %v570_v9 = vrot.slane %v553_v58, 1  ;;  %v246_v22 = vsel %vm242_vm2, %v241_v33, %v239_v28 }
  0x46   : > { %v444_v60 = vsel %vm229_vm0, %v440_v53, %v442_v56  ;;  %v458_v61 = vsel %vm242_vm2, %v454_v57, %v452_v54  ;;  %v1523_v63 = vadd.f32 %v358_v55, %v349_v52  ;;  %v232_v23 = vsel %vm229_vm0, %v227_v13, %v225_v12 }
  0x47   : > { %v465_v6 = vadd.f32 %v444_v60, %v437_v49  ;;  %v562_v7 = vsel %vm229_vm0, %v558_v62, %v556_v59  ;;  %v461_v17 = vsel %vm222_vm1, %v458_v61, 0.0  ;;  %v234_v25 = vsel %vm219_vm3, %v232_v23, 0.0 }
  0x48   : > { %364 = vrot.lane.b32.xlu1 %v1502_v47, %s1267_s20  ;;  %v564_v18 = vsel %vm219_vm3, %v562_v7, 0.0  ;;  %v243_v19 = vsel %vm242_vm2, %v238_v14, %v240_v15  ;;  %v446_v20 = vsel %vm229_vm0, %v442_v56, %v440_v53  ;;  %v572_v12 = vsel %vm242_vm2, %v568_v8, %v570_v9 }
  0x49   : > { %v580_v24 = vadd.f32 %v564_v18, %v552_v50  ;;  %v1555_v26 = vadd.f32 %v465_v6, %v461_v17  ;;  %v251_v13 = vadd.f32 %v234_v25, %v1423_v5  ;;  %v448_v27 = vsel %vm219_vm3, %v446_v20, 0.0 }
  0x4a   : > { %370 = vrot.lane.b32.xlu2 %v1523_v63, %s1267_s20  ;;  %v1564_v28 = vmul.f32 %v1468_v29, %v1468_v29  ;;  %v1568_v14 = vmul.f32 %v1471_v30, %v1471_v30  ;;  %v250_v15 = vsel %vm222_vm1, %v246_v22, 0.0  ;;  %v254_v32 = vadd.f32 %v231_v21, %v1438_v16 }
  0x4b   : > { %v337_v33 = vsel %vm229_vm0, %v333_v41, %v335_v42  ;;  %v1575_v34 = vadd.f32 %v251_v13, %v243_v19  ;;  %v1577_v36 = vadd.f32 %v580_v24, %v572_v12  ;;  %v351_v37 = vsel %vm242_vm2, %v347_v45, %v345_v44 }
  0x4c   : > { %v557_v38 = vrot.slane %v1564_v28, 7  ;;  %v559_v39 = vrot.slane %v1568_v14, 7  ;;  %v464_v40 = vadd.f32 %v448_v27, %v436_v46  ;;  %v438_v41 = vmul.f32 %v1432_v11, %v1432_v11 }
  0x4d   : > { %260 = vrot.lane.b32.xlu0 %v1575_v34, %s1267_s20  ;;  %v439_v42 = vmul.f32 %v1438_v16, %v1438_v16  ;;  %v456_v44 = vsel %vm242_vm2, %v452_v54, %v454_v57  ;;  %v1593_v45 = vadd.f32 %v254_v32, %v250_v15  ;;  %v355_v48 = vsel %vm222_vm1, %v351_v37, 0.0 }
  0x4e   : > { %v563_v46 = vsel %vm229_vm0, %v559_v39, %v557_v38  ;;  %v668_v49 = vmul.f32 %v1416_v3, %v1423_v5  ;;  %v359_v50 = vadd.f32 %v337_v33, %v1471_v30  ;;  %v560_v51 = vsel %vm229_vm0, %v556_v59, %v558_v62 }
  0x4f   : > { %v574_v52 = vsel %vm242_vm2, %v570_v9, %v568_v8  ;;  %v669_v53 = vmul.f32 %v1419_v4, %v1430_v10  ;;  %v1614_v54 = vadd.f32 %v464_v40, %v456_v44  ;;  %v569_v55 = vrot.slane %v1564_v28, 1 }
  0x50   : > { %475 = vrot.lane.b32.xlu1 %v1555_v26, %s1267_s20  ;;  %v441_v56 = vrot.slane %v438_v41, 7  ;;  %v443_v57 = vrot.slane %v439_v42, 7  ;;  %v566_v60 = vsel %vm219_vm3, %v563_v46, 0.0  ;;  %v571_v61 = vrot.slane %v1568_v14, 1 }
  0x51   : > { %v453_v6 = vrot.slane %v438_v41, 1  ;;  %v455_v7 = vrot.slane %v439_v42, 1  ;;  %v672_v59 = vrot.slane %v668_v49, 7  ;;  %v674_v62 = vrot.slane %v669_v53, 7 }
  0x52   : > { %588 = vrot.lane.b32.xlu2 %v1577_v36, %s1267_s20  ;;  %v1620_v17 = vadd.f32 %v359_v50, %v355_v48  ;;  %v581_v8 = vadd.f32 %v560_v51, %v553_v58  ;;  %v582_v9 = vadd.f32 %v566_v60, %v1564_v28  ;;  %v577_v18 = vsel %vm222_vm1, %v574_v52, 0.0 }
  0x53   : > { %v445_v21 = vsel %vm229_vm0, %v441_v56, %v443_v57  ;;  %v573_v22 = vsel %vm242_vm2, %v569_v55, %v571_v61  ;;  %v459_v58 = vsel %vm242_vm2, %v455_v7, %v453_v6  ;;  %v678_v23 = vsel %vm229_vm0, %v674_v62, %v672_v59 }
  0x54   : > { %v447_v24 = vsel %vm229_vm0, %v443_v57, %v441_v56  ;;  %v1641_v25 = vadd.f32 %v581_v8, %v577_v18  ;;  %v467_v19 = vadd.f32 %v445_v21, %v439_v42  ;;  %v1643_v20 = vadd.f32 %v582_v9, %v573_v22 }
  0x55   : > { %472 = vrot.lane.b32.xlu0 %v1614_v54, %s1267_s20  ;;  %v463_v12 = vsel %vm222_vm1, %v459_v58, 0.0  ;;  %v684_v13 = vrot.slane %v668_v49, 1  ;;  %v686_v27 = vrot.slane %v669_v53, 1  ;;  %v680_v15 = vsel %vm219_vm3, %v678_v23, 0.0 }
  0x56   : > { %v450_v32 = vsel %vm219_vm3, %v447_v24, 0.0  ;;  %v670_v33 = vmul.f32 %v1468_v29, %v1432_v11  ;;  %v671_v37 = vmul.f32 %v1471_v30, %v1438_v16  ;;  %v1655_v40 = vadd.f32 %v467_v19, %v463_v12 }
  0x57   : > { %v457_v42 = vsel %vm242_vm2, %v453_v6, %v455_v7  ;;  %v696_v44 = vadd.f32 %v680_v15, %v668_v49  ;;  %v466_v48 = vadd.f32 %v450_v32, %v438_v41  ;;  %v676_v46 = vsel %vm229_vm0, %v672_v59, %v674_v62 }
  0x58   : > { %269 = vrot.lane.b32.xlu1 %v1593_v45, %s1267_s20  ;;  %v688_v50 = vsel %vm242_vm2, %v684_v13, %v686_v27  ;;  %v690_v51 = vsel %vm242_vm2, %v686_v27, %v684_v13  ;;  %v673_v52 = vrot.slane %v670_v33, 7  ;;  %v675_v56 = vrot.slane %v671_v37, 7 }
  0x59   : > { %v685_v57 = vrot.slane %v670_v33, 1  ;;  %v687_v60 = vrot.slane %v671_v37, 1  ;;  %v697_v6 = vadd.f32 %v676_v46, %v669_v53  ;;  %v1671_v7 = vadd.f32 %v696_v44, %v688_v50 }
  0x5a   : > { %373 = vrot.lane.b32.xlu2 %v1620_v17, %s1267_s20  ;;  %v1673_v41 = vadd.f32 %v466_v48, %v457_v42  ;;  %v693_v49 = vsel %vm222_vm1, %v690_v51, 0.0  ;;  %v677_v59 = vsel %vm229_vm0, %v673_v52, %v675_v56  ;;  %v561_v62 = vsel %vm229_vm0, %v557_v38, %v559_v39 }
  0x5b   : > { %v691_v53 = vsel %vm242_vm2, %v687_v60, %v685_v57  ;;  %v575_v8 = vsel %vm242_vm2, %v571_v61, %v569_v55  ;;  %v1689_v9 = vadd.f32 %v697_v6, %v693_v49  ;;  %v699_v18 = vadd.f32 %v677_v59, %v671_v37 }
  0x5c   : > { %v583_v28 = vadd.f32 %v561_v62, %v1568_v14  ;;  %v695_v38 = vsel %vm222_vm1, %v691_v53, 0.0  ;;  %v579_v39 = vsel %vm222_vm1, %v575_v8, 0.0  ;;  %v679_v14 = vsel %vm229_vm0, %v675_v56, %v673_v52 }
  0x5d   : > { %591 = vrot.lane.b32.xlu0 %v1641_v25, %s1267_s20  ;;  %v1702_v55 = vadd.f32 %v699_v18, %v695_v38  ;;  %v682_v2 = vsel %vm219_vm3, %v679_v14, 0.0  ;;  %v689_v22 = vsel %vm242_vm2, %v685_v57, %v687_v60  ;;  %vm904_vm7 = vcmask 130048  }
  0x5e   : > { %v1704_v61 = vadd.f32 %v583_v28, %v579_v39  ;;  %v698_v21 = vadd.f32 %v682_v2, %v670_v33 }
  0x60   : > { %594 = vrot.lane.b32.xlu1 %v1643_v20, %s1267_s20  ;;  %v1716_v58 = vadd.f32 %v698_v21, %v689_v22 }
  0x62   : > { %481 = vrot.lane.b32.xlu2 %v1655_v40, %s1267_s20 }
  0x65   : > { %478 = vrot.lane.b32.xlu0 %v1673_v41, %s1267_s20 }
  0x68   : > { %704 = vrot.lane.b32.xlu1 %v1671_v7, %s1267_s20 }
  0x6a   : > { %707 = vrot.lane.b32.xlu2 %v1689_v9, %s1267_s20 }
  0x6d   : > { %597 = vrot.lane.b32.xlu0 %v1704_v61, %s1267_s20 }
  0x70   : > { %713 = vrot.lane.b32.xlu1 %v1702_v55, %s1267_s20 }
  0x75   : > { %710 = vrot.lane.b32.xlu0 %v1716_v58, %s1267_s20 }
  0x9c   : > { %v267_v23 = vpop.permute.xlu2 %266 }
  0x9d   : > { %v268_v59 = vsel %vm259_vm4, %v267_v23, %v1496_v43 }
  0xa4   : > { %v371_v24 = vpop.permute.xlu2 %370 }
  0xa5   : > { %v372_v46 = vsel %vm259_vm4, %v371_v24, %v1523_v63 }
  0xac   : > { %v589_v19 = vpop.permute.xlu2 %588 }
  0xad   : > { %v590_v38 = vsel %vm259_vm4, %v589_v19, %v1577_v36 }
  0xb2   : > { %v368_v12 = vpop.permute.xlu1 %367  ;;  %v264_v13 = vpop.permute.xlu0 %263 }
  0xb3   : > { %v369_v27 = vsel %vm259_vm4, %v368_v12, %v1473_v31  ;;  %v265_v1 = vsel %vm259_vm4, %v264_v13, %v1480_v35 }
  0xb4   : > { %378 = vrot.lane.b32.xlu2 %v369_v27, %s1267_s20  ;;  %v374_v15 = vpop.permute.xlu2 %373  ;;  %274 = vrot.lane.b32.xlu0 %v265_v1, %s1267_s20 }
  0xb5   : > { %v375_v32 = vsel %vm259_vm4, %v374_v15, %v1620_v17 }
  0xb6   : > { %382 = vrot.lane.b32.xlu1 %v375_v32, %s1267_s20 }
  0xba   : > { %v365_v33 = vpop.permute.xlu1 %364 }
  0xbb   : > { %v366_v37 = vsel %vm259_vm4, %v365_v33, %v1502_v47 }
  0xbc   : > { %v482_v50 = vpop.permute.xlu2 %481 }
  0xbd   : > { %v483_v57 = vsel %vm259_vm4, %v482_v50, %v1655_v40 }
  0xbe   : > { %376 = vrot.lane.b32.xlu1 %v366_v37, %s1267_s20 }
  0xbf   : > { %v261_v44 = vpop.permute.xlu0 %260 }
  0xc0   : > { %v262_v48 = vsel %vm259_vm4, %v261_v44, %v1575_v34 }
  0xc1   : > { %272 = vrot.lane.b32.xlu2 %v262_v48, %s1267_s20 }
  0xc2   : > { %v476_v42 = vpop.permute.xlu1 %475 }
  0xc3   : > { %v477_v28 = vsel %vm259_vm4, %v476_v42, %v1555_v26 }
  0xc4   : > { %v708_v60 = vpop.permute.xlu2 %707 }
  0xc5   : > { %v709_v53 = vsel %vm259_vm4, %v708_v60, %v1689_v9 }
  0xc6   : > { %380 = vrot.lane.b32.xlu1 %v372_v46, %s1267_s20 }
  0xc7   : > { %v473_v52 = vpop.permute.xlu0 %472 }
  0xc8   : > { %v474_v23 = vsel %vm259_vm4, %v473_v52, %v1614_v54 }
  0xca   : > { %v270_v51 = vpop.permute.xlu1 %269 }
  0xcb   : > { %v271_v56 = vsel %vm259_vm4, %v270_v51, %v1593_v45 }
  0xcc   : > { %278 = vrot.lane.b32.xlu0 %v271_v56, %s1267_s20 }
  0xce   : > { %490 = vrot.lane.b32.xlu1 %v483_v57, %s1267_s20 }
  0xcf   : > { %v592_v49 = vpop.permute.xlu0 %591 }
  0xd0   : > { %v593_v62 = vsel %vm259_vm4, %v592_v49, %v1641_v25 }
  0xd1   : > { %602 = vrot.lane.b32.xlu2 %v593_v62, %s1267_s20 }
  0xd2   : > { %v595_v6 = vpop.permute.xlu1 %594 }
  0xd3   : > { %v596_v22 = vsel %vm259_vm4, %v595_v6, %v1643_v20 }
  0xd4   : > { %276 = vrot.lane.b32.xlu0 %v268_v59, %s1267_s20 }
  0xd6   : > { %718 = vrot.lane.b32.xlu1 %v709_v53, %s1267_s20 }
  0xd7   : > { %v479_v18 = vpop.permute.xlu0 %478 }
  0xd8   : > { %v480_v19 = vsel %vm259_vm4, %v479_v18, %v1673_v41 }
  0xda   : > { %v705_v8 = vpop.permute.xlu1 %704 }
  0xdb   : > { %v706_v24 = vsel %vm259_vm4, %v705_v8, %v1671_v7 }
  0xdc   : > { %486 = vrot.lane.b32.xlu0 %v477_v28, %s1267_s20 }
  0xde   : > { %600 = vrot.lane.b32.xlu1 %v590_v38, %s1267_s20 }
  0xdf   : > { %v598_v14 = vpop.permute.xlu0 %597 }
  0xe0   : > { %v599_v21 = vsel %vm259_vm4, %v598_v14, %v1704_v61 }
  0xe1   : > { %606 = vrot.lane.b32.xlu2 %v599_v21, %s1267_s20 }
  0xe2   : > { %v714_v39 = vpop.permute.xlu1 %713 }
  0xe3   : > { %v715_v2 = vsel %vm259_vm4, %v714_v39, %v1702_v55 }
  0xe4   : > { %722 = vrot.lane.b32.xlu0 %v715_v2, %s1267_s20 }
  0xe7   : > { %v711_v12 = vpop.permute.xlu0 %710 }
  0xe8   : > { %v712_v13 = vsel %vm259_vm4, %v711_v12, %v1716_v58 }
  0xe9   : > { %484 = vrot.lane.b32.xlu2 %v474_v23, %s1267_s20 }
  0xec   : > { %604 = vrot.lane.b32.xlu0 %v596_v22, %s1267_s20 }
  0xf1   : > { %488 = vrot.lane.b32.xlu2 %v480_v19, %s1267_s20 }
  0xf4   : > { %716 = vrot.lane.b32.xlu0 %v706_v24, %s1267_s20 }
  0xf9   : > { %720 = vrot.lane.b32.xlu2 %v712_v13, %s1267_s20 }
 0x10e   : > { %v379_v27 = vpop.permute.xlu2 %378 }
 0x10f   : > { %v385_v1 = vsel %vm259_vm4, %v379_v27, %v1473_v31  ;;  %v1842_v27 = vand.u32 127, %v214_v0 }
 0x110   : > { %394 = vrot.lane.b32.xlu1 %v385_v1, %s1268_s30 }
 0x111   : > { %vm223_vm5 = vcmp.gt.s32.totalorder %v1842_v27, 0  ;;  %vm224_vm6 = vcmp.lt.s32.totalorder %v1842_v27, 15 }
 0x11b   : > { %v273_v44 = vpop.permute.xlu2 %272 }
 0x11c   : > { %v280_v51 = vsel %vm259_vm4, %v273_v44, %v1575_v34 }
 0x126   : > { %v275_v15 = vpop.permute.xlu0 %274 }
 0x127   : > { %v281_v32 = vsel %vm259_vm4, %v275_v15, %v1480_v35 }
 0x128   : > { %306 = vrot.lane.b32.xlu1 %v281_v32, %s1269_s16  ;;  %290 = vrot.lane.b32.xlu2 %v281_v32, %s1268_s30  ;;  %v383_v33 = vpop.permute.xlu1 %382 }
 0x129   : > { %v387_v37 = vsel %vm259_vm4, %v383_v33, %v1620_v17 }
 0x12b   : > { %v603_v6 = vpop.permute.xlu2 %602 }
 0x12c   : > { %v609_v8 = vsel %vm259_vm4, %v603_v6, %v1641_v25 }
 0x130   : > { %410 = vrot.lane.b32.xlu1 %v385_v1, %s1269_s16  ;;  %398 = vrot.lane.b32.xlu2 %v387_v37, %s1268_s30  ;;  %v377_v42 = vpop.permute.xlu1 %376 }
 0x131   : > { %v384_v56 = vsel %vm259_vm4, %v377_v42, %v1502_v47 }
 0x138   : > { %414 = vrot.lane.b32.xlu2 %v387_v37, %s1269_s16  ;;  %v381_v48 = vpop.permute.xlu1 %380 }
 0x139   : > { %v386_v49 = vsel %vm259_vm4, %v381_v48, %v1523_v63 }
 0x13b   : > { %v607_v62 = vpop.permute.xlu2 %606 }
 0x13c   : > { %v611_v39 = vsel %vm259_vm4, %v607_v62, %v1704_v61 }
 0x13e   : > { %v279_v46 = vpop.permute.xlu0 %278 }
 0x13f   : > { %v283_v50 = vsel %vm259_vm4, %v279_v46, %v1593_v45 }
 0x140   : > { %310 = vrot.lane.b32.xlu1 %v283_v50, %s1269_s16  ;;  %294 = vrot.lane.b32.xlu0 %v283_v50, %s1268_s30  ;;  %v491_v60 = vpop.permute.xlu1 %490 }
 0x141   : > { %v495_v53 = vsel %vm259_vm4, %v491_v60, %v1655_v40 }
 0x143   : > { %v485_v38 = vpop.permute.xlu2 %484 }
 0x144   : > { %v492_v24 = vsel %vm259_vm4, %v485_v38, %v1614_v54 }
 0x146   : > { %v277_v52 = vpop.permute.xlu0 %276 }
 0x147   : > { %v282_v57 = vsel %vm259_vm4, %v277_v52, %v1496_v43 }
 0x148   : > { %288 = vrot.lane.b32.xlu1 %v280_v51, %s1268_s30  ;;  %392 = vrot.lane.b32.xlu0 %v384_v56, %s1268_s30  ;;  %v719_v59 = vpop.permute.xlu1 %718 }
 0x149   : > { %292 = vrot.lane.b32.xlu2 %v282_v57, %s1268_s30  ;;  %v725_v1 = vsel %vm259_vm4, %v719_v59, %v1689_v9 }
 0x14b   : > { %v489_v21 = vpop.permute.xlu2 %488 }
 0x14c   : > { %v494_v22 = vsel %vm259_vm4, %v489_v21, %v1673_v41 }
 0x14e   : > { %v487_v18 = vpop.permute.xlu0 %486 }
 0x14f   : > { %v493_v23 = vsel %vm259_vm4, %v487_v18, %v1555_v26 }
 0x150   : > { %304 = vrot.lane.b32.xlu0 %v280_v51, %s1269_s16  ;;  %308 = vrot.lane.b32.xlu1 %v282_v57, %s1269_s16  ;;  %v601_v28 = vpop.permute.xlu1 %600 }
 0x151   : > { %396 = vrot.lane.b32.xlu2 %v386_v49, %s1268_s30  ;;  %v608_v14 = vsel %vm259_vm4, %v601_v28, %v1577_v36 }
 0x153   : > { %v721_v13 = vpop.permute.xlu2 %720 }
 0x154   : > { %v726_v37 = vsel %vm259_vm4, %v721_v13, %v1716_v58 }
 0x156   : > { %v723_v2 = vpop.permute.xlu0 %722 }
 0x157   : > { %v727_v46 = vsel %vm259_vm4, %v723_v2, %v1702_v55 }
 0x158   : > { %408 = vrot.lane.b32.xlu0 %v384_v56, %s1269_s16  ;;  %522 = vrot.lane.b32.xlu1 %v495_v53, %s1269_s16 }
 0x159   : > { %618 = vrot.lane.b32.xlu2 %v609_v8, %s1268_s30 }
 0x15e   : > { %v605_v19 = vpop.permute.xlu0 %604 }
 0x15f   : > { %v610_v12 = vsel %vm259_vm4, %v605_v19, %v1643_v20 }
 0x160   : > { %412 = vrot.lane.b32.xlu0 %v386_v49, %s1269_s16  ;;  %616 = vrot.lane.b32.xlu1 %v608_v14, %s1268_s30 }
 0x161   : > { %622 = vrot.lane.b32.xlu2 %v611_v39, %s1268_s30 }
 0x166   : > { %v717_v44 = vpop.permute.xlu0 %716 }
 0x167   : > { %v724_v50 = vsel %vm259_vm4, %v717_v44, %v1671_v7 }
 0x168   : > { %504 = vrot.lane.b32.xlu1 %v494_v22, %s1268_s30  ;;  %502 = vrot.lane.b32.xlu0 %v493_v23, %s1268_s30 }
 0x169   : > { %500 = vrot.lane.b32.xlu2 %v492_v24, %s1268_s30 }
 0x170   : > { %518 = vrot.lane.b32.xlu0 %v493_v23, %s1269_s16  ;;  %620 = vrot.lane.b32.xlu1 %v610_v12, %s1268_s30 }
 0x171   : > { %516 = vrot.lane.b32.xlu2 %v492_v24, %s1269_s16 }
 0x178   : > { %634 = vrot.lane.b32.xlu0 %v609_v8, %s1269_s16  ;;  %520 = vrot.lane.b32.xlu1 %v494_v22, %s1269_s16 }
 0x179   : > { %632 = vrot.lane.b32.xlu2 %v608_v14, %s1269_s16 }
 0x180   : > { %506 = vrot.lane.b32.xlu0 %v495_v53, %s1268_s30  ;;  %734 = vrot.lane.b32.xlu1 %v725_v1, %s1268_s30 }
 0x181   : > { %638 = vrot.lane.b32.xlu2 %v611_v39, %s1269_s16 }
 0x182   : > { %v395_v15 = vpop.permute.xlu1 %394  ;;  %v291_v33 = vpop.permute.xlu2 %290 }
 0x183   : > { %v405_v32 = vsel %vm223_vm5, %v395_v15, 0.0  ;;  %v301_v0 = vsel %vm223_vm5, %v291_v33, 0.0 }
 0x184   : > { %v321_v60 = vadd.f32 %v301_v0, %v1480_v35  ;;  %v425_v62 = vadd.f32 %v405_v32, %v1473_v31 }
 0x188   : > { %636 = vrot.lane.b32.xlu0 %v610_v12, %s1269_s16  ;;  %750 = vrot.lane.b32.xlu1 %v725_v1, %s1269_s16 }
 0x189   : > { %736 = vrot.lane.b32.xlu2 %v726_v37, %s1268_s30 }
 0x18a   : > { %v399_v42 = vpop.permute.xlu2 %398 }
 0x18b   : > { %v407_v48 = vsel %vm223_vm5, %v399_v42, 0.0 }
 0x18c   : > { %v427_v51 = vadd.f32 %v407_v48, %v1620_v17 }
 0x190   : > { %754 = vrot.lane.b32.xlu1 %v727_v46, %s1269_s16  ;;  %732 = vrot.lane.b32.xlu0 %v724_v50, %s1268_s30 }
 0x191   : > { %738 = vrot.lane.b32.xlu2 %v727_v46, %s1268_s30 }
 0x192   : > { %v415_v52 = vpop.permute.xlu2 %414 }
 0x193   : > { %v423_v56 = vsel %vm224_vm6, %v415_v52, 0.0 }
 0x194   : > { %v431_v57 = vadd.f32 %v427_v51, %v423_v56 }
 0x196   : > { %v435_v15 = vmul.f32 0.11111111, %v431_v57 }
 0x198   : > { %748 = vrot.lane.b32.xlu0 %v724_v50, %s1269_s16  ;;  %v1905_v48 = vmul.f32 %v435_v15, %v435_v15 }
 0x19a   : > { %v307_v6 = vpop.permute.xlu1 %306 }
 0x19b   : > { %v317_v49 = vsel %vm224_vm6, %v307_v6, 0.0 }
 0x19c   : > { %v325_v59 = vadd.f32 %v321_v60, %v317_v49 }
 0x19e   : > { %v329_v53 = vmul.f32 0.11111111, %v325_v59 }
 0x1a0   : > { %752 = vrot.lane.b32.xlu0 %v726_v37, %s1269_s16  ;;  %v785_v38 = vmul.f32 2.0, %v329_v53  ;;  %v1884_v14 = vmul.f32 %v329_v53, %v329_v53 }
 0x1a2   : > { %v411_v17 = vpop.permute.xlu1 %410 }
 0x1a3   : > { %v1878_v8 = vpop.permute.xlu2 %292  ;;  %v421_v18 = vsel %vm224_vm6, %v411_v17, 0.0 }
 0x1a4   : > { %v429_v28 = vadd.f32 %v425_v62, %v421_v18 }
 0x1a6   : > { %v433_v39 = vmul.f32 0.11111111, %v429_v28 }
 0x1a8   : > { %v1882_v35 = vmul.f32 %v785_v38, %v433_v39  ;;  %v1886_v2 = vmul.f32 %v433_v39, %v433_v39  ;;  %v1888_v21 = vmul.f32 %v433_v39, %v329_v53 }
 0x1aa   : > { %v1894_v31 = vadd.f32 %v1886_v2, %v1884_v14 }
 0x1ab   : > { %v1890_v22 = vpop.permute.xlu2 %396 }
 0x1b2   : > { %v311_v23 = vpop.permute.xlu1 %310  ;;  %v295_v24 = vpop.permute.xlu0 %294 }
 0x1b3   : > { %v1896_v19 = vpop.permute.xlu2 %618  ;;  %v303_v12 = vsel %vm223_vm5, %v295_v24, 0.0  ;;  %v319_v1 = vsel %vm224_vm6, %v311_v23, 0.0 }
 0x1b4   : > { %v323_v13 = vadd.f32 %v303_v12, %v1593_v45 }
 0x1b6   : > { %v327_v32 = vadd.f32 %v323_v13, %v319_v1 }
 0x1b8   : > { %v331_v33 = vmul.f32 0.11111111, %v327_v32 }
 0x1ba   : > { %v1903_v0 = vmul.f32 %v331_v33, %v331_v33  ;;  %v787_v37 = vmul.f32 2.0, %v331_v33  ;;  %v289_v42 = vpop.permute.xlu1 %288  ;;  %v393_v44 = vpop.permute.xlu0 %392  ;;  %v1907_v46 = vmul.f32 %v435_v15, %v331_v33 }
 0x1bb   : > { %v623_v50 = vpop.permute.xlu2 %622  ;;  %v404_v51 = vsel %vm223_vm5, %v393_v44, 0.0  ;;  %v300_v56 = vsel %vm223_vm5, %v289_v42, 0.0 }
 0x1bc   : > { %v1913_v45 = vadd.f32 %v1905_v48, %v1903_v0  ;;  %v1915_v52 = vmul.f32 %v787_v37, %v435_v15  ;;  %v320_v59 = vadd.f32 %v300_v56, %v1575_v34  ;;  %v424_v53 = vadd.f32 %v404_v51, %v1502_v47 }
 0x1c2   : > { %v309_v57 = vpop.permute.xlu1 %308  ;;  %v305_v60 = vpop.permute.xlu0 %304 }
 0x1c3   : > { %v501_v6 = vpop.permute.xlu2 %500  ;;  %v316_v49 = vsel %vm224_vm6, %v305_v60, 0.0 }
 0x1c4   : > { %v324_v62 = vadd.f32 %v320_v59, %v316_v49  ;;  %v512_v23 = vsel %vm223_vm5, %v501_v6, 0.0 }
 0x1c5   : > { %v532_v1 = vadd.f32 %v512_v23, %v1614_v54 }
 0x1c6   : > { %v328_v17 = vmul.f32 0.11111111, %v324_v62  ;;  %v631_v62 = vsel %vm223_vm5, %v623_v50, 0.0 }
 0x1c7   : > { %v651_v23 = vadd.f32 %v631_v62, %v1704_v61 }
 0x1c8   : > { %v784_v12 = vmul.f32 2.0, %v328_v17  ;;  %v544_v47 = vmul.f32 %v328_v17, %v328_v17 }
 0x1ca   : > { %v1923_v18 = vpop.permute.xlu1 %522  ;;  %v409_v28 = vpop.permute.xlu0 %408 }
 0x1cb   : > { %v517_v38 = vpop.permute.xlu2 %516  ;;  %v420_v39 = vsel %vm224_vm6, %v409_v28, 0.0 }
 0x1cc   : > { %v428_v24 = vadd.f32 %v424_v53, %v420_v39  ;;  %v528_v34 = vsel %vm224_vm6, %v517_v38, 0.0 }
 0x1cd   : > { %v536_v37 = vadd.f32 %v532_v1, %v528_v34 }
 0x1ce   : > { %v432_v13 = vmul.f32 0.11111111, %v428_v24 }
 0x1cf   : > { %v540_v49 = vmul.f32 0.11111111, %v536_v37 }
 0x1d0   : > { %v1932_v15 = vmul.f32 %v784_v12, %v432_v13  ;;  %v660_v32 = vmul.f32 %v432_v13, %v432_v13  ;;  %v1934_v33 = vmul.f32 %v432_v13, %v328_v17 }
 0x1d1   : > { %v548_v17 = vsub.f32 %v540_v49, %v544_v47  ;;  %v629_v49 = vsel %vm223_vm5, %v1896_v19, 0.0 }
 0x1d2   : > { %v617_v42 = vpop.permute.xlu1 %616  ;;  %v808_v44 = vadd.f32 %v660_v32, %v544_v47  ;;  %v413_v51 = vpop.permute.xlu0 %412 }
 0x1d3   : > { %v628_v56 = vsel %vm223_vm5, %v617_v42, 0.0  ;;  %v633_v60 = vpop.permute.xlu2 %632 }
 0x1d4   : > { %v648_v6 = vadd.f32 %v628_v56, %v1577_v36  ;;  %v644_v54 = vsel %vm224_vm6, %v633_v60, 0.0  ;;  %v812_v1 = vadd.f32 0.0001, %v808_v44  ;;  %v406_v44 = vsel %vm223_vm5, %v1890_v22, 0.0 }
 0x1d5   : > { %v318_v22 = vsel %vm224_vm6, %v309_v57, 0.0 }
 0x1d6   : > { %v652_v59 = vadd.f32 %v648_v6, %v644_v54 }
 0x1d8   : > { %v656_v53 = vmul.f32 0.11111111, %v652_v59  ;;  %v302_v59 = vsel %vm223_vm5, %v1878_v8, 0.0 }
 0x1d9   : > { %v322_v19 = vadd.f32 %v302_v59, %v1496_v43 }
 0x1da   : > { %v664_v28 = vsub.f32 %v656_v53, %v660_v32  ;;  %v505_v38 = vpop.permute.xlu1 %504  ;;  %v503_v39 = vpop.permute.xlu0 %502  ;;  %v426_v53 = vadd.f32 %v406_v44, %v1523_v63  ;;  %v531_v44 = vsel %vm224_vm6, %v1923_v18, 0.0 }
 0x1db   : > { %v639_v24 = vpop.permute.xlu2 %638  ;;  %v513_v50 = vsel %vm223_vm5, %v503_v39, 0.0 }
 0x1dc   : > { %v816_v12 = vadd.f32 %v664_v28, %v548_v17  ;;  %v647_v36 = vsel %vm224_vm6, %v639_v24, 0.0  ;;  %v533_v61 = vadd.f32 %v513_v50, %v1555_v26  ;;  %v422_v26 = vsel %vm224_vm6, %v413_v51, 0.0 }
 0x1dd   : > { %v655_v13 = vadd.f32 %v651_v23, %v647_v36  ;;  %v649_v17 = vadd.f32 %v629_v49, %v1641_v25  ;;  %v430_v23 = vadd.f32 %v426_v53, %v422_v26  ;;  %v514_v25 = vsel %vm223_vm5, %v505_v38, 0.0 }
 0x1de   : > { %v820_v34 = vadd.f32 0.0009, %v816_v12  ;;  %v326_v12 = vadd.f32 %v322_v19, %v318_v22  ;;  %v534_v50 = vadd.f32 %v514_v25, %v1673_v41  ;;  %v813_v38 = vadd.f32 0.0001, %v1894_v31 }
 0x1df   : > { %v1946_v37 = vmul.f32 0.11111111, %v655_v13  ;;  %v1979_v63 = vmul.f32 0.11111111, %v430_v23 }
 0x1e0   : > { %v1950_v42 = vmul.f32 %v820_v34, %v812_v1  ;;  %v1984_v36 = vmul.f32 0.11111111, %v326_v12 }
 0x1e1   : > { %v667_v47 = vsub.f32 %v1946_v37, %v1905_v48 }
 0x1e2   : > { %v621_v32 = vpop.permute.xlu1 %620  ;;  %v519_v56 = vpop.permute.xlu0 %518  ;;  %1139 = vrcp.f32 %v1950_v42  ;;  %v546_v41 = vmul.f32 %v1984_v36, %v1984_v36  ;;  %vm833_vm13 = vweird.f32 %v1950_v42 }
 0x1e3   : > { %v529_v60 = vsel %vm224_vm6, %v519_v56, 0.0  ;;  %v1976_v51 = vpop.permute.xlu2 %736  ;;  %v662_v56 = vmul.f32 %v1979_v63, %v1979_v63  ;;  %v630_v26 = vsel %vm223_vm5, %v621_v32, 0.0 }
 0x1e4   : > { %v537_v6 = vadd.f32 %v533_v61, %v529_v60 }
 0x1e6   : > { %v541_v54 = vmul.f32 0.11111111, %v537_v6 }
 0x1e8   : > { %v549_v62 = vsub.f32 %v541_v54, %v1884_v14  ;;  %v1995_v6 = vpop.eup %1139 }
 0x1e9   : > { %v2010_v53 = vmul.f32 %v1995_v6, %v1950_v42  ;;  %vm834_vm14 = vweird.f32 %v1995_v6 }
 0x1ea   : > { %v521_v28 = vpop.permute.xlu1 %520  ;;  %v635_v39 = vpop.permute.xlu0 %634  ;;  %vm2082_vm1 = vmor %vm833_vm13, %vm834_vm14 }
 0x1eb   : > { %v645_v8 = vsel %vm224_vm6, %v635_v39, 0.0  ;;  %v530_v43 = vsel %vm224_vm6, %v521_v28, 0.0  ;;  %v739_v31 = vpop.permute.xlu2 %738  ;;  %v650_v28 = vadd.f32 %v630_v26, %v1643_v20 }
 0x1ec   : > { %v653_v24 = vadd.f32 %v649_v17, %v645_v8  ;;  %v538_v54 = vadd.f32 %v534_v50, %v530_v43  ;;  %v793_v17 = vadd.f32 0.0001, %v1882_v35  ;;  %v747_v32 = vsel %vm223_vm5, %v739_v31, 0.0 }
 0x1ee   : > { %v657_v14 = vmul.f32 0.11111111, %v653_v24  ;;  %v542_v22 = vmul.f32 0.11111111, %v538_v54  ;;  %v815_v24 = vadd.f32 0.0001, %v1913_v45 }
 0x1f0   : > { %v665_v57 = vsub.f32 %v657_v14, %v1886_v2  ;;  %v550_v43 = vsub.f32 %v542_v22, %v546_v41 }
 0x1f2   : > { %v817_v13 = vadd.f32 %v665_v57, %v549_v62  ;;  %v735_v1 = vpop.permute.xlu1 %734  ;;  %v507_v34 = vpop.permute.xlu0 %506  ;;  %v810_v62 = vadd.f32 %v662_v56, %v546_v41 }
 0x1f3   : > { %v515_v61 = vsel %vm223_vm5, %v507_v34, 0.0 }
 0x1f4   : > { %v821_v60 = vadd.f32 0.0009, %v817_v13  ;;  %v535_v2 = vadd.f32 %v515_v61, %v1655_v40  ;;  %v745_v40 = vsel %vm223_vm5, %v735_v1, 0.0  ;;  %v814_v14 = vadd.f32 0.0001, %v810_v62 }
 0x1f5   : > { %v765_v39 = vadd.f32 %v745_v40, %v1689_v9  ;;  %v830_v9 = vsub.f32 1.0, %v2010_v53  ;;  %v921_v61 = vsub.f32 %v1423_v5, %v1416_v3 }
 0x1f6   : > { %v2002_v49 = vmul.f32 %v821_v60, %v813_v38  ;;  %v539_v59 = vadd.f32 %v535_v2, %v531_v44  ;;  %v924_v44 = vsub.f32 %v1438_v16, %v1471_v30 }
 0x1f7   : > { %v925_v3 = vand.u32 2147483647, %v921_v61 }
 0x1f8   : > { %1141 = vrcp.f32 %v2002_v49  ;;  %v543_v18 = vmul.f32 0.11111111, %v539_v59  ;;  %v851_v45 = vand.u32 2147483647, %v2002_v49  ;;  %v853_v37 = vand.u32 2147483648, %v2002_v49 }
 0x1f9   : > { %vm847_vm8 = vweird.f32 %v2002_v49  ;;  %v929_v62 = vsel %vm904_vm7, %v925_v3, 0.0 }
 0x1fa   : > { %v551_v19 = vsub.f32 %v543_v18, %v1903_v0  ;;  %v751_v23 = vpop.permute.xlu1 %750  ;;  %v637_v8 = vpop.permute.xlu0 %636  ;;  %v767_v0 = vadd.f32 %v747_v32, %v1702_v55  ;;  %v923_v55 = vsub.f32 %v1432_v11, %v1468_v29  ;;  %v854_v16 = vor.u32 1.1754944e-38, %v853_v37 }
 0x1fb   : > { %v761_v12 = vsel %vm224_vm6, %v751_v23, 0.0  ;;  %v646_v35 = vsel %vm224_vm6, %v637_v8, 0.0  ;;  %vm852_vm11 = vcmp.eq.f32.partialorder %v851_v45, 8.507059e+37 }
 0x1fc   : > { %v819_v20 = vadd.f32 %v667_v47, %v551_v19  ;;  %v769_v25 = vadd.f32 %v765_v39, %v761_v12  ;;  %v654_v57 = vadd.f32 %v650_v28, %v646_v35  ;;  %v922_v47 = vsub.f32 %v1430_v10, %v1419_v4 }
 0x1fd   : > { %v927_v11 = vand.u32 2147483647, %v923_v55 }
 0x1fe   : > { %v1142_v13 = vpop.eup %1141  ;;  %v823_v1 = vadd.f32 0.0009, %v819_v20  ;;  %v773_v34 = vmul.f32 0.11111111, %v769_v25  ;;  %v658_v50 = vmul.f32 0.11111111, %v654_v57 }
 0x1ff   : > { %v843_v48 = vmul.f32 %v1142_v13, %v2002_v49  ;;  %v926_v5 = vand.u32 2147483647, %v922_v47  ;;  %vm848_vm9 = vweird.f32 %v1142_v13  ;;  %v932_v18 = vsel %vm904_vm7, %v927_v11, 0.0 }
 0x200   : > { %v2038_v38 = vmul.f32 %v823_v1, %v815_v24  ;;  %v781_v60 = vsub.f32 %v773_v34, %v1888_v21  ;;  %v666_v2 = vsub.f32 %v658_v50, %v662_v56  ;;  %v928_v56 = vand.u32 2147483647, %v924_v44  ;;  %vm849_vm10 = vmor %vm847_vm8, %vm848_vm9 }
 0x201   : > { %v844_v41 = vsub.f32 1.0, %v843_v48  ;;  %v930_v53 = vsel %vm904_vm7, %v926_v5, 0.0  ;;  %v746_v50 = vsel %vm223_vm5, %v1976_v51, 0.0  ;;  %v837_v51 = vand.u32 2147483647, %v1950_v42 }
 0x202   : > { %1143 = vrcp.f32 %v2038_v38  ;;  %v797_v54 = vmul.f32 2.0, %v781_v60  ;;  %v818_v4 = vadd.f32 %v666_v2, %v550_v43  ;;  %v755_v10 = vpop.permute.xlu1 %754  ;;  %v733_v59 = vpop.permute.xlu0 %732  ;;  %v931_v39 = vadd.f32 %v930_v53, %v929_v62 }
 0x203   : > { %v845_v29 = vmul.f32 %v1142_v13, %v844_v41  ;;  %v763_v21 = vsel %vm224_vm6, %v755_v10, 0.0  ;;  %v744_v23 = vsel %vm223_vm5, %v733_v59, 0.0  ;;  %v934_v8 = vsel %vm904_vm7, %v928_v56, 0.0 }
 0x204   : > { %v801_v26 = vadd.f32 0.0009, %v797_v54  ;;  %v822_v30 = vadd.f32 0.0009, %v818_v4  ;;  %v771_v31 = vadd.f32 %v767_v0, %v763_v21  ;;  %v933_v35 = vadd.f32 %v932_v18, %v931_v39 }
 0x205   : > { %v846_v40 = vadd.f32 %v1142_v13, %v845_v29  ;;  %v831_v43 = vmul.f32 %v1995_v6, %v830_v9  ;;  %v881_v61 = vand.u32 2147483648, %v2038_v38  ;;  %vm875_vm15 = vweird.f32 %v2038_v38 }
 0x206   : > { %v805_v22 = vmul.f32 %v801_v26, %v793_v17  ;;  %v2052_v28 = vmul.f32 %v822_v30, %v814_v14  ;;  %v775_v32 = vmul.f32 0.11111111, %v771_v31  ;;  %v764_v14 = vadd.f32 %v744_v23, %v1671_v7 }
 0x207   : > { %v850_v19 = vsel %vm849_vm10, %v1142_v13, %v846_v40  ;;  %v935_v57 = vadd.f32 %v934_v8, %v933_v35  ;;  %v795_v13 = vadd.f32 0.0001, %v1915_v52  ;;  %v879_v7 = vand.u32 2147483647, %v2038_v38 }
 0x208   : > { %v1144_v24 = vpop.eup %1143  ;;  %v855_v12 = vsel %vm852_vm11, %v854_v16, %v850_v19  ;;  %1145 = vrcp.f32 %v2052_v28  ;;  %v783_v17 = vsub.f32 %v775_v32, %v1907_v46  ;;  %v832_v52 = vadd.f32 %v1995_v6, %v831_v43 }
 0x209   : > { %v885_v49 = vmul.f32 %v855_v12, %v805_v22  ;;  %v871_v0 = vmul.f32 %v1144_v24, %v2038_v38  ;;  %936 = vadd.xlane.f32.xlu0 %v935_v57  ;;  %vm876_vm12 = vweird.f32 %v1144_v24  ;;  %v766_v44 = vadd.f32 %v746_v50, %v1716_v58 }
 0x20a   : > { %v799_v20 = vmul.f32 2.0, %v783_v17  ;;  %v749_v25 = vpop.permute.xlu0 %748  ;;  %v839_v41 = vand.u32 2147483648, %v1950_v42  ;;  %vm877_vm0 = vmor %vm875_vm15, %vm876_vm12  ;;  %v882_v5 = vor.u32 1.1754944e-38, %v881_v61  ;;  %vm880_vm2 = vcmp.eq.f32.partialorder %v879_v7, 8.507059e+37 }
 0x20b   : > { %v760_v45 = vsel %vm224_vm6, %v749_v25, 0.0  ;;  %v872_v46 = vsub.f32 1.0, %v871_v0  ;;  %v889_v54 = vsub.f32 1.0, %v885_v49  ;;  %v836_v58 = vsel %vm2082_vm1, %v1995_v6, %v832_v52 }
 0x20c   : > { %v803_v1 = vadd.f32 0.0009, %v799_v20  ;;  %v768_v34 = vadd.f32 %v764_v14, %v760_v45  ;;  %v786_v16 = vmul.f32 2.0, %v1984_v36  ;;  %v840_v30 = vor.u32 1.1754944e-38, %v839_v41 }
 0x20d   : > { %v873_v47 = vmul.f32 %v1144_v24, %v872_v46  ;;  %v778_v31 = vmul.f32 %v1979_v63, %v1984_v36  ;;  %vm838_vm3 = vcmp.eq.f32.partialorder %v837_v51, 8.507059e+37  ;;  %v893_v62 = vmul.f32 0.5, %v889_v54 }
 0x20e   : > { %v2070_v48 = vpop.eup %1145  ;;  %v807_v9 = vmul.f32 %v803_v1, %v795_v13  ;;  %v772_v37 = vmul.f32 0.11111111, %v768_v34  ;;  %v790_v6 = vmul.f32 %v786_v16, %v1979_v63  ;;  %v841_v27 = vsel %vm838_vm3, %v840_v30, %v836_v58 }
 0x20f   : > { %v857_v55 = vmul.f32 %v2070_v48, %v2052_v28  ;;  %v874_v2 = vadd.f32 %v1144_v24, %v873_v47  ;;  %vm862_vm4 = vweird.f32 %v2070_v48  ;;  %vm861_vm5 = vweird.f32 %v2052_v28 }
 0x210   : > { %v780_v60 = vsub.f32 %v772_v37, %v1934_v33  ;;  %v792_v33 = vadd.f32 0.0001, %v1932_v15  ;;  %v867_v32 = vand.u32 2147483648, %v2052_v28  ;;  %v865_v36 = vand.u32 2147483647, %v2052_v28 }
 0x211   : > { %v858_v3 = vsub.f32 1.0, %v857_v55  ;;  %v878_v11 = vsel %vm877_vm0, %v1144_v24, %v874_v2  ;;  %v897_v23 = vmax.f32 %v893_v62, 0.0  ;;  %v794_v8 = vadd.f32 0.0001, %v790_v6 }
 0x212   : > { %v796_v10 = vmul.f32 2.0, %v780_v60  ;;  %v753_v59 = vpop.permute.xlu0 %752  ;;  %v883_v38 = vsel %vm880_vm2, %v882_v5, %v878_v11  ;;  %v868_v35 = vor.u32 1.1754944e-38, %v867_v32  ;;  %vm866_vm8 = vcmp.eq.f32.partialorder %v865_v36, 8.507059e+37 }
 0x213   : > { %v762_v42 = vsel %vm224_vm6, %v753_v59, 0.0  ;;  %v859_v56 = vmul.f32 %v2070_v48, %v858_v3  ;;  %v887_v26 = vmul.f32 %v883_v38, %v807_v9  ;;  %vm863_vm6 = vmor %vm861_vm5, %vm862_vm4  ;;  %v901_v14 = vmin.f32 %v897_v23, 1.0 }
 0x214   : > { %v800_v29 = vadd.f32 0.0009, %v796_v10  ;;  %v770_v21 = vadd.f32 %v766_v44, %v762_v42 }
 0x215   : > { %v860_v22 = vadd.f32 %v2070_v48, %v859_v56  ;;  %v891_v12 = vsub.f32 1.0, %v887_v26  ;;  %v906_v13 = vsel %vm904_vm7, %v901_v14, 0.0 }
 0x216   : > { %v804_v15 = vmul.f32 %v800_v29, %v792_v33  ;;  %v774_v40 = vmul.f32 0.11111111, %v770_v21 }
 0x217   : > { %v864_v63 = vsel %vm863_vm6, %v2070_v48, %v860_v22  ;;  %v895_v0 = vmul.f32 0.5, %v891_v12 }
 0x218   : > { %v884_v53 = vmul.f32 %v841_v27, %v804_v15  ;;  %v782_v18 = vsub.f32 %v774_v40, %v778_v31  ;;  %v869_v25 = vsel %vm866_vm8, %v868_v35, %v864_v63 }
 0x219   : > { %v899_v46 = vmax.f32 %v895_v0, 0.0 }
 0x21a   : > { %v888_v39 = vsub.f32 1.0, %v884_v53  ;;  %v798_v19 = vmul.f32 2.0, %v782_v18 }
 0x21b   : > { %v903_v61 = vmin.f32 %v899_v46, 1.0 }
 0x21c   : > { %v802_v24 = vadd.f32 0.0009, %v798_v19  ;;  %v892_v17 = vmul.f32 0.5, %v888_v39 }
 0x21d   : > { %v910_v37 = vsel %vm904_vm7, %v903_v61, 0.0 }
 0x21e   : > { %v806_v49 = vmul.f32 %v802_v24, %v794_v8  ;;  %v896_v20 = vmax.f32 %v892_v17, 0.0 }
 0x220   : > { %v886_v57 = vmul.f32 %v869_v25, %v806_v49  ;;  %v900_v43 = vmin.f32 %v896_v20, 1.0 }
 0x222   : > { %v890_v45 = vsub.f32 1.0, %v886_v57  ;;  %v905_v28 = vsel %vm904_vm7, %v900_v43, 0.0 }
 0x223   : > { %v907_v1 = vadd.f32 %v906_v13, %v905_v28 }
 0x224   : > { %v894_v34 = vmul.f32 0.5, %v890_v45 }
 0x226   : > { %v898_v50 = vmax.f32 %v894_v34, 0.0 }
 0x228   : > { %v902_v7 = vmin.f32 %v898_v50, 1.0 }
 0x22a   : > { %v908_v48 = vsel %vm904_vm7, %v902_v7, 0.0 }
 0x22b   : > { %v909_v9 = vadd.f32 %v908_v48, %v907_v1 }
 0x22d   : > { %v911_v47 = vadd.f32 %v910_v37, %v909_v9 }
 0x22f   : > { %912 = vadd.xlane.f32.xlu2 %v911_v47 }
 0x27c   : > { %v937_v52 = vpop.xlane.xlu0 %936 }
 0x27d   : > { %v938_v55 = vrot.slane %v937_v52, 4 }
 0x27f   : > { %v939_v51 = vadd.f32 %v938_v55, %v937_v52 }
 0x281   : > { %v940_v60 = vrot.slane %v939_v51, 2 }
 0x283   : > { %v941_v3 = vadd.f32 %v940_v60, %v939_v51 }
 0x285   : > { %v942_v4 = vrot.slane %v941_v3, 1 }
 0x287   : > { %v943_v11 = vadd.f32 %v942_v4, %v941_v3 }
 0x2a2   : > { %v913_v2 = vpop.xlane.xlu2 %912 }
 0x2a3   : > { %v914_v44 = vrot.slane %v913_v2, 4 }
 0x2a5   : > { %v915_v41 = vadd.f32 %v914_v44, %v913_v2 }
 0x2a7   : > { %v916_v5 = vrot.slane %v915_v41, 2 }
 0x2a9   : > { %v917_v54 = vadd.f32 %v916_v5, %v915_v41 }
 0x2ab   : > { %v918_v10 = vrot.slane %v917_v54, 1 }
 0x2ad   : > { %v919_v59 = vadd.f32 %v918_v10, %v917_v54 }
 0x2af   : > { %1070 = vpush %v919_v59 }
 0x2b0   : > { %1072 = vpush %v943_v11 }
 0x2e0   : > { %s1071_s6 = spop %1070 }
 0x2e1   : > { %s946_s23 = sadd.f32 %s1071_s6, %s945_s27  ;;  %s1073_s29 = spop %1072 }
 0x2e2   : > { %s950_s3 = sadd.f32 %s1073_s29, %s1059_s19 }
 0x2e3   : > { %948 = sst [smem:[#allocation2]] %s946_s23 }
 0x2e4   : > { %952 = sst [smem:[#allocation2 + $0x1]] %s950_s3 }
 0x2e5   : > { %1082 = sst [smem:[#allocation8]] (%p2113_p5), %s946_s23 }
 0x2e6   : > { %1083 = sst [smem:[#allocation8 + $0x1]] (%p2113_p5), %s950_s3 }
 0x2e7   : > { %1085 = dma.smem_to_hbm (%p2113_p5), %s1271_s12, 16, %s970_s28, [#allocation5]  }
 0x2e8   : > { %1246 = dma.done.wait (%p2113_p5), [#allocation5], 16  }
 0x2e9   : > { %1248 = vsyncadd (%p2113_p5), [#allocation5], 4294967280 }
 0x2ea   : > { %978 = sfence }
 0x2eb PF: > { %p16_p7 = scmp.ge.s32.totalorder %s1307_s14, 6   ;;  %s2154_s9 = smov %s1255_s10 }
 0x2ec   : > { %s2155_s10 = smov %s1259_s11  ;;  %s2156_s11 = smov %s1317_s17 }
 0x2ed   : > { %s2157_s12 = smov %s1307_s14  ;;  %18 = sbr.rel (!%p16_p7) target bundleno = 6 (0x6), region = 92 }
 0x2f2   :  { %984 = vsyncpa [#allocation4], 1 }
 0x2f3   :  { %986 = vsyncpa [#allocation4 + $0x1], 1 }
 0x2f4   :  { %987 = vsyncpa [#allocation7], 1 }
 0x2f5   :  { %989 = vsyncpa [#allocation7 + $0x1], 1 }
 0x2f6   :  { %990 = vsyncpa [#allocation5], 1 }
 0x2f7   :  { %992 = vsyncpa [#allocation5 + $0x1], 1 }

</bundles_post_ra>
